<compile_context>
chip_gen: v7x
topology: tpu7x:2x2x1
jax: 0.10.0
libtpu: 0.0.40
codegen_flags: <defaults>
</compile_context>

<pallas_src>
import functools

import jax
import jax.numpy as jnp
from jax.experimental import pallas as pl
from jax.experimental.pallas import tpu as pltpu

HIDDEN = 50
LANE = 128  # TPU lane width; pad feature dims to this for dense stores / MXU


def _round_up(n, m):
    return ((n + m - 1) // m) * m


def _net_kernel(x_ref, w1_ref, b1_ref, w2_ref, b2_ref, out_ref):
    # x: (TB, S) f32 -> bf16 for the MXU; w1: (S, Hp) bf16; b1: (1, Hp) f32
    # w2: (Hp, Ap) bf16; b2: (1, Ap) f32; out: (TB, Ap) f32
    x = x_ref[...].astype(jnp.bfloat16)
    h = jnp.dot(x, w1_ref[...], preferred_element_type=jnp.float32)
    h = jnp.maximum(h + b1_ref[...], 0.0)                      # bias + ReLU in f32
    out = jnp.dot(h.astype(jnp.bfloat16), w2_ref[...],
                  preferred_element_type=jnp.float32) + b2_ref[...]
    out_ref[...] = out.astype(out_ref.dtype)


def init_params(key, n_states, n_actions):
    """Logical (unpadded, f32) params matching the PyTorch init."""
    k1, k2, k3, k4 = jax.random.split(key, 4)
    # nn.Linear + weight.data.normal_(0, 0.1); biases keep the PyTorch default
    # U(-1/sqrt(fan_in), 1/sqrt(fan_in)).
    w1 = 0.1 * jax.random.normal(k1, (n_states, HIDDEN), jnp.float32)
    b1 = jax.random.uniform(
        k2, (1, HIDDEN), jnp.float32,
        minval=-1.0 / jnp.sqrt(n_states), maxval=1.0 / jnp.sqrt(n_states))
    w2 = 0.1 * jax.random.normal(k3, (HIDDEN, n_actions), jnp.float32)
    b2 = jax.random.uniform(
        k4, (1, n_actions), jnp.float32,
        minval=-1.0 / jnp.sqrt(HIDDEN), maxval=1.0 / jnp.sqrt(HIDDEN))
    return w1, b1, w2, b2


def pad_params(w1, b1, w2, b2):
    """One-time padding to lane-dense shapes + bf16 cast of the MXU operands."""
    S, H = w1.shape
    A = w2.shape[1]
    Hp = _round_up(H, LANE)
    Ap = _round_up(A, LANE)
    w1p = jnp.zeros((S, Hp), jnp.bfloat16).at[:, :H].set(w1.astype(jnp.bfloat16))
    b1p = jnp.zeros((1, Hp), jnp.float32).at[:, :H].set(b1.astype(jnp.float32))
    w2p = jnp.zeros((Hp, Ap), jnp.bfloat16).at[:H, :A].set(w2.astype(jnp.bfloat16))
    b2p = jnp.zeros((1, Ap), jnp.float32).at[:, :A].set(b2.astype(jnp.float32))
    return w1p, b1p, w2p, b2p


@functools.partial(jax.jit, static_argnames=("n_actions", "block_b"))
def net_forward(x, w1p, b1p, w2p, b2p, *, n_actions, block_b=512):
    B, S = x.shape
    Hp = w1p.shape[1]
    Ap = w2p.shape[1]

    # Batch tile: large for real (replay-batch) workloads, shrinks for tiny B.
    TB = min(block_b, _round_up(B, 8))
    B_pad = _round_up(B, TB)
    if B_pad != B:
        x = jnp.pad(x, ((0, B_pad - B), (0, 0)))

    out = pl.pallas_call(
        _net_kernel,
        out_shape=jax.ShapeDtypeStruct((B_pad, Ap), jnp.float32),
        grid=(B_pad // TB,),
        in_specs=[
            pl.BlockSpec((TB, S), lambda i: (i, 0)),   # x: tiled over batch
            pl.BlockSpec((S, Hp), lambda i: (0, 0)),   # weights/biases resident
            pl.BlockSpec((1, Hp), lambda i: (0, 0)),
            pl.BlockSpec((Hp, Ap), lambda i: (0, 0)),
            pl.BlockSpec((1, Ap), lambda i: (0, 0)),
        ],
        out_specs=pl.BlockSpec((TB, Ap), lambda i: (i, 0)),
        compiler_params=pltpu.CompilerParams(
            dimension_semantics=("parallel",)),        # megacore on v7x
    )(x, w1p, b1p, w2p, b2p)

    return out[:B, :n_actions]


if __name__ == "__main__":
    key = jax.random.PRNGKey(0)
    N_STATES, N_ACTIONS, BATCH = 8, 4, 2

    kx, kp, kb = jax.random.split(key, 3)
    x = jax.random.normal(kx, (BATCH, N_STATES), jnp.float32)
    w1, b1, w2, b2 = init_params(kp, N_STATES, N_ACTIONS)
    w1p, b1p, w2p, b2p = pad_params(w1, b1, w2, b2)

    # Small-shape run (matches the module's usage in maadqn).
    out = net_forward(x, w1p, b1p, w2p, b2p, n_actions=N_ACTIONS)
    jax.block_until_ready(out)

    # Reference in plain f32 JAX (kernel uses bf16 MXU operands -> loose tol).
    ref = jnp.maximum(x @ w1 + b1, 0.0) @ w2 + b2
    assert out.shape == (BATCH, N_ACTIONS)
    assert jnp.allclose(out, ref, atol=2e-2, rtol=2e-2)

    # Exercise the multi-tile (grid > 1) batched path with a non-aligned batch.
    xb = jax.random.normal(kb, (300, N_STATES), jnp.float32)
    outb = net_forward(xb, w1p, b1p, w2p, b2p, n_actions=N_ACTIONS, block_b=128)
    jax.block_until_ready(outb)
    refb = jnp.maximum(xb @ w1 + b1, 0.0) @ w2 + b2
    assert outb.shape == (300, N_ACTIONS)
    assert jnp.allclose(outb, refb, atol=2e-2, rtol=2e-2)

    print("KERNEL_OK")
</pallas_src>

<mosaic_0001>
module attributes {stable_mosaic.version = 11 : i64} {
  func.func @_net_kernel(%arg0: i32, %arg1: memref<8x8xf32, #tpu.memory_space<vmem>>, %arg2: memref<8x128xbf16, #tpu.memory_space<vmem>>, %arg3: memref<1x128xf32, #tpu.memory_space<vmem>>, %arg4: memref<128x128xbf16, #tpu.memory_space<vmem>>, %arg5: memref<1x128xf32, #tpu.memory_space<vmem>>, %arg6: memref<8x128xf32, #tpu.memory_space<vmem>>) attributes {dimension_semantics = [#tpu.dimension_semantics<parallel>], iteration_bounds = array<i64: 1>, scalar_prefetch = 0 : i64, scratch_operands = 0 : i64, tpu.core_type = #tpu.core_type<tc>, window_params = [{transform_indices = @transform_0, window_bounds = array<i64: 8, 8>}, {pipeline_mode = #tpu.pipeline_mode<synchronous>, transform_indices = @transform_1, window_bounds = array<i64: 8, 128>}, {pipeline_mode = #tpu.pipeline_mode<synchronous>, transform_indices = @transform_2, window_bounds = array<i64: 1, 128>}, {pipeline_mode = #tpu.pipeline_mode<synchronous>, transform_indices = @transform_3, window_bounds = array<i64: 128, 128>}, {pipeline_mode = #tpu.pipeline_mode<synchronous>, transform_indices = @transform_4, window_bounds = array<i64: 1, 128>}, {transform_indices = @transform_5, window_bounds = array<i64: 8, 128>}]} {
    %c0 = arith.constant 0 : index
    %c0_0 = arith.constant 0 : index
    %0 = vector.load %arg1[%c0, %c0_0] : memref<8x8xf32, #tpu.memory_space<vmem>>, vector<8x8xf32>
    %1 = arith.truncf %0 : vector<8x8xf32> to vector<8x8xbf16>
    %c0_1 = arith.constant 0 : index
    %c0_2 = arith.constant 0 : index
    %2 = vector.load %arg2[%c0_1, %c0_2] : memref<8x128xbf16, #tpu.memory_space<vmem>>, vector<8x128xbf16>
    %cst = arith.constant dense<0.000000e+00> : vector<8x128xf32>
    %3 = tpu.matmul %1, %2, %cst {dimension_numbers = #tpu.dot_dimension_numbers<[1], [0], [0], [1], [0, 0, 1, 1], [], []>} : vector<8x8xbf16>, vector<8x128xbf16>, vector<8x128xf32> -> vector<8x128xf32>
    %c0_3 = arith.constant 0 : index
    %c0_4 = arith.constant 0 : index
    %4 = vector.load %arg3[%c0_3, %c0_4] : memref<1x128xf32, #tpu.memory_space<vmem>>, vector<1x128xf32>
    %5 = vector.broadcast %4 : vector<1x128xf32> to vector<8x128xf32>
    %6 = arith.addf %3, %5 : vector<8x128xf32>
    %cst_5 = arith.constant 0.000000e+00 : f32
    %7 = vector.broadcast %cst_5 : f32 to vector<8x128xf32>
    %8 = arith.maximumf %6, %7 : vector<8x128xf32>
    %9 = arith.truncf %8 : vector<8x128xf32> to vector<8x128xbf16>
    %c0_6 = arith.constant 0 : index
    %c0_7 = arith.constant 0 : index
    %10 = vector.load %arg4[%c0_6, %c0_7] : memref<128x128xbf16, #tpu.memory_space<vmem>>, vector<128x128xbf16>
    %cst_8 = arith.constant dense<0.000000e+00> : vector<8x128xf32>
    %11 = tpu.matmul %9, %10, %cst_8 {dimension_numbers = #tpu.dot_dimension_numbers<[1], [0], [0], [1], [0, 0, 1, 1], [], []>} : vector<8x128xbf16>, vector<128x128xbf16>, vector<8x128xf32> -> vector<8x128xf32>
    %c0_9 = arith.constant 0 : index
    %c0_10 = arith.constant 0 : index
    %12 = vector.load %arg5[%c0_9, %c0_10] : memref<1x128xf32, #tpu.memory_space<vmem>>, vector<1x128xf32>
    %13 = vector.broadcast %12 : vector<1x128xf32> to vector<8x128xf32>
    %14 = arith.addf %11, %13 : vector<8x128xf32>
    %c0_11 = arith.constant 0 : index
    %c0_12 = arith.constant 0 : index
    %15 = vector.load %arg6[%c0_11, %c0_12] : memref<8x128xf32, #tpu.memory_space<vmem>>, vector<8x128xf32>
    tpu.vector_store %arg6[%c0_11, %c0_12], %14 {strides = array<i32>} : memref<8x128xf32, #tpu.memory_space<vmem>>, vector<8x128xf32>,
    return
  }
  func.func @transform_0(%arg0: i32) -> (i32, i32) {
    %c0_i32 = arith.constant 0 : i32
    %c0_i32_0 = arith.constant 0 : i32
    return %arg0, %c0_i32 : i32, i32
  }
  func.func @transform_1(%arg0: i32) -> (i32, i32) {
    %c0_i32 = arith.constant 0 : i32
    %c0_i32_0 = arith.constant 0 : i32
    %c0_i32_1 = arith.constant 0 : i32
    return %c0_i32, %c0_i32_0 : i32, i32
  }
  func.func @transform_2(%arg0: i32) -> (i32, i32) {
    %c0_i32 = arith.constant 0 : i32
    %c0_i32_0 = arith.constant 0 : i32
    %c0_i32_1 = arith.constant 0 : i32
    return %c0_i32, %c0_i32_0 : i32, i32
  }
  func.func @transform_3(%arg0: i32) -> (i32, i32) {
    %c0_i32 = arith.constant 0 : i32
    %c0_i32_0 = arith.constant 0 : i32
    %c0_i32_1 = arith.constant 0 : i32
    return %c0_i32, %c0_i32_0 : i32, i32
  }
  func.func @transform_4(%arg0: i32) -> (i32, i32) {
    %c0_i32 = arith.constant 0 : i32
    %c0_i32_0 = arith.constant 0 : i32
    %c0_i32_1 = arith.constant 0 : i32
    return %c0_i32, %c0_i32_0 : i32, i32
  }
  func.func @transform_5(%arg0: i32) -> (i32, i32) {
    %c0_i32 = arith.constant 0 : i32
    %c0_i32_0 = arith.constant 0 : i32
    return %arg0, %c0_i32 : i32, i32
  }
}

</mosaic_0001>

<bundles_post_ra>
// kernel: net_forward.1
= control target key start
LH: loop header
LB: loop body
LE: loop exit
PB: predicated region body
PF: predicated region fallthrough
CT: control target
= control target key end

     0   :  { %10 = vsyncpa [#allocation3], 0  ;;  %s297_s18 = smov [#allocation2]   ;;  %s359_s0 = inlined_call_operand.vmem [shape: f32[8,8], index: 0, kind: input, shape index: {}]   ;;  %s360_s1 = inlined_call_operand.vmem [shape: bf16[8,128], index: 1, kind: input, shape index: {}]   ;;  %s361_s2 = inlined_call_operand.vmem [shape: f32[1,128], index: 2, kind: input, shape index: {}]   ;;  %s362_s3 = inlined_call_operand.hbm [shape: bf16[128,128], index: 3, kind: input, shape index: {}]   ;;  %s363_s4 = inlined_call_operand.vmem [shape: f32[1,128], index: 4, kind: input, shape index: {}]   ;;  %s364_s5 = inlined_call_operand.vmem [shape: f32[8,128], index: 5, kind: output, shape index: {}]  }
   0x1   :  { %s22_s19 = sshll.u32 %s297_s18, 4  ;;  %s273_s22 = scalar_lea.hbm %s362_s3, 1024  ;;  %s23_s19 = int_to_ptr.vmem [resolvable:$true] %s22_s19 }
   0x2   :  { %p274_p0 = scmp.ne.s32.totalorder %s362_s3, %s273_s22  ;;  %p277_p1 = scmp.lt.u32.totalorder %s273_s22, %s362_s3 }
   0x4   :  { %p279_p2 = pnand %p277_p1, %p274_p0 }
   0x6   :  { %282 = shalt.err (!%p279_p2)
}
   0x7   :  { %s283_s27 = scalar_lea.vmem %s23_s19, 1024  ;;  %p288_p4 = scmp.lt.s32.totalorder %s23_s19, %s23_s19 }
   0x8   :  { %p284_p3 = scmp.ne.s32.totalorder %s23_s19, %s283_s27  ;;  %p289_p5 = scmp.lt.s32.totalorder %s283_s27, %s283_s27 }
   0xa   :  { %p290_p6 = por %p289_p5, %p288_p4 }
   0xc   :  { %p291_p7 = pnand %p290_p6, %p284_p3 }
   0xe   :  { %294 = shalt.err (!%p291_p7)
}
   0xf   :  { %s298_s28 = smov 64   ;;  %s299_s29 = smov 4  }
  0x10   :  { %28 = dma.hbm_to_vmem [thread:$0]  %s362_s3, 1024, %s23_s19, [#allocation3], %s298_s28, %s298_s28, %s299_s29  }
  0x11   :  { %295 = dma.done.wait [#allocation3], 1024  }
  0x12   :  { %296 = vsyncadd [#allocation3], 4294966272  ;;  %v300_v0 = vmov 0.0   ;;  %vm301_vm0 = vmmov 0   ;;  %vm49_vm1 = vcmask 1043456   ;;  %v35_v2 = vld [vmem:[%s359_s0] sm:$0xff] }
  0x13   :  { %234 = vmatprep.subr.bf16.mxu0 %v300_v0  ;;  %236 = vmatprep.mubr.msk.bf16.mxu0 %vm301_vm0, %v300_v0  ;;  %v37_v1 = vld [vmem:[%s360_s1] sm:$0xf]  ;;  %v36_v4 = vpack.c.bf16 %v35_v2, %v35_v2  ;;  %vm45_vm2 = vcmask 64512   ;;  %v266_v6 = vld [vmem:[#allocation2 + $0x8] sm:$0xff]   ;;  %v267_v7 = vld [vmem:[#allocation2 + $0x10] sm:$0xff]  }
  0x14   :  { %240 = vmatprep.subr.bf16.mxu1 %v300_v0  ;;  %256 = vmatprep.mubr.msk.bf16.mxu1 %vm301_vm0, %v300_v0  ;;  %v51_v3 = vsel %vm49_vm1, %v37_v1, 0  ;;  %v265_v5 = vld [vmem:[#allocation2] sm:$0xff]   ;;  %v268_v8 = vld [vmem:[#allocation2 + $0x18] sm:$0xff]   ;;  %v270_v10 = vld [vmem:[#allocation2 + $0x28] sm:$0xff]  }
  0x15   :  { %235 = vmatpush3.bf16.msra.mxu0 %v51_v3  ;;  %241 = vmatpush3.bf16.msra.mxu1 %v265_v5  ;;  %v269_v9 = vld [vmem:[#allocation2 + $0x20] sm:$0xff]   ;;  %v271_v11 = vld [vmem:[#allocation2 + $0x30] sm:$0xff]   ;;  %v272_v12 = vld [vmem:[#allocation2 + $0x38] sm:$0xff]  }
  0x16   :  { %242 = vmatprep.subr.bf16.mxu1 %v300_v0  ;;  %v212_v13 = vld [vmem:[%s361_s2] ss:$0 sm:$0xff] }
  0x17   :  { %v214_v21 = vld [vmem:[%s363_s4] ss:$0 sm:$0xff] }
  0x18   :  { %237 = vmatmul.mubr.msk.bf16.vlgmr.msra.gmra.mrb[0].mxu0 %vm45_vm2, %v36_v4 }
  0x19   :  { %243 = vmatpush3.bf16.msra.mxu1 %v266_v6 }
  0x1a   :  { %244 = vmatprep.subr.bf16.mxu1 %v300_v0 }
  0x1d   :  { %245 = vmatpush3.bf16.msra.mxu1 %v267_v7 }
  0x1e   :  { %246 = vmatprep.subr.bf16.mxu1 %v300_v0 }
  0x21   :  { %247 = vmatpush3.bf16.msra.mxu1 %v268_v8 }
  0x22   :  { %248 = vmatprep.subr.bf16.mxu1 %v300_v0 }
  0x25   :  { %249 = vmatpush3.bf16.msra.mxu1 %v269_v9 }
  0x26   :  { %250 = vmatprep.subr.bf16.mxu1 %v300_v0 }
  0x29   :  { %251 = vmatpush3.bf16.msra.mxu1 %v270_v10 }
  0x2a   :  { %252 = vmatprep.subr.bf16.mxu1 %v300_v0 }
  0x2d   :  { %253 = vmatpush3.bf16.msra.mxu1 %v271_v11 }
  0x2e   :  { %254 = vmatprep.subr.bf16.mxu1 %v300_v0 }
  0x31   :  { %255 = vmatpush3.bf16.msra.mxu1 %v272_v12 }
  0xeb   :  { %v87_v14 = vpop.f32.mrb[0].mxu0 }
  0xec   :  { %v88_v15 = vadd.f32 %v212_v13, %v87_v14  ;;  %v238_v16 = vpop.f32.mrb[1].mxu0 }
  0xed   :  { %v90_v17 = vpop.f32.mrb[2].mxu0 }
  0xee   :  { %v93_v18 = vmax.f32 %v88_v15, 0.0  ;;  %v239_v19 = vpop.f32.mrb[3].mxu0 }
  0xf0   :  { %v94_v20 = vpack.c.bf16 %v93_v18, %v93_v18 }
  0xf2   :  { %257 = vmatmul.mubr.bf16.vlgmr.msra.gmra.mrb[0].mxu1 %v94_v20 }
 0x1c5   :  { %v200_v22 = vpop.f32.mrb[0].mxu1 }
 0x1c6   :  { %v201_v23 = vadd.f32 %v214_v21, %v200_v22  ;;  %v258_v24 = vpop.f32.mrb[1].mxu1 }
 0x1c7   :  { %v203_v25 = vpop.f32.mrb[2].mxu1 }
 0x1c8   :  { %206 = vst [vmem:[%s364_s5] sm:$0xff] %v201_v23  ;;  %v259_v26 = vpop.f32.mrb[3].mxu1 }
 0x1c9   :  { %211 = vsyncpa [#allocation3], 1 }

</bundles_post_ra>
